<compile_context>
chip_gen: v5e
topology: v5e:2x2
jax: 0.10.0
libtpu: 0.0.40
codegen_flags: <defaults>
</compile_context>

<pallas_src>
import functools

import jax
import jax.numpy as jnp
from jax import lax
from jax.experimental import pallas as pl
from jax.experimental.pallas import tpu as pltpu

EPS = 1e-5


def _pick_tile(l, candidates=(8192, 4096, 2048, 1024, 512, 256, 128)):
    """Largest 128-multiple lane-tile that divides the per-image spatial extent."""
    for c in candidates:
        if c <= l and l % c == 0:
            return c
    return l


# --------------------------------------------------------------------------
# Pass 1 (stats): BN1(fold) + ReLU + 1x1 conv, emit per-tile sum / sum-sq of
# y (for BN2 batch statistics).  x tile is (CIN, TL); y stays in registers.
# --------------------------------------------------------------------------
def _stats_kernel(x_ref, s1_ref, b1_ref, w1t_ref, cb1_ref, ssum_ref, ssq_ref):
    x = x_ref[...]                                            # (CIN, TL) f32
    h = jnp.maximum(x * s1_ref[...] + b1_ref[...], 0.0)       # BN1 + ReLU (f32)
    # (C1, TL) = w1^T (C1, CIN) . h (CIN, TL)   -- bf16 operands, f32 acc
    y = lax.dot_general(w1t_ref[...], h.astype(jnp.bfloat16),
                        (((1,), (0,)), ((), ())),
                        preferred_element_type=jnp.float32)
    y = y + cb1_ref[...]                                      # (C1, TL) f32
    ssum_ref[...] = jnp.sum(y, axis=1, keepdims=True)         # (C1, 1)
    ssq_ref[...] = jnp.sum(y * y, axis=1, keepdims=True)      # (C1, 1)


# --------------------------------------------------------------------------
# Pass 2 (per image): recompute y, BN2 + ReLU, 3x3 conv as ONE fused
# (COUT, 9*C1) x (9*C1, L) matmul over pltpu.roll-shifted, border-masked
# slabs, then fused channel concat with x into the (CIN+COUT, L) output.
# --------------------------------------------------------------------------
def _fused_kernel(x_ref, s1_ref, b1_ref, w1t_ref, cb1_ref,
                  s2_ref, b2_ref, m9_ref, w2m_ref, cb2_ref, o_ref,
                  *, H, W, CIN, C1, COUT):
    L = H * W
    x = x_ref[...]                                            # (CIN, L) f32

    # 1x1 stage (recompute; K=CIN is essentially free)
    h = jnp.maximum(x * s1_ref[...] + b1_ref[...], 0.0)
    y = lax.dot_general(w1t_ref[...], h.astype(jnp.bfloat16),
                        (((1,), (0,)), ((), ())),
                        preferred_element_type=jnp.float32)   # (C1, L)
    y = y + cb1_ref[...]

    # BN2 + ReLU (batch stats folded into scale/shift by the wrapper)
    t = jnp.maximum(y * s2_ref[...] + b2_ref[...], 0.0)       # (C1, L) f32

    # 3x3 conv: 9 lane-rolled slabs, border-masked, stacked to K = 9*C1
    slabs = []
    for ky in range(3):
        for kx in range(3):
            k = ky * 3 + kx
            off = (ky - 1) * W + (kx - 1)
            if off == 0:
                shifted = t
            else:
                shifted = pltpu.roll(t, shift=(-off) % L, axis=1)  # XLU lane roll
            slabs.append(shifted * m9_ref[k])                 # zero invalid taps
    stack = jnp.concatenate(slabs, axis=0).astype(jnp.bfloat16)   # (9*C1, L)

    conv = lax.dot_general(w2m_ref[...], stack,
                           (((1,), (0,)), ((), ())),
                           preferred_element_type=jnp.float32)    # (COUT, L)
    conv = conv + cb2_ref[...]

    # fused torch.cat([x, conv], dim=1), channels-first (NCHW compatible)
    o_ref[...] = jnp.concatenate([x, conv], axis=0)           # (CIN+COUT, L)


# --------------------------------------------------------------------------
# Wrapper: accepts / returns NCHW (PyTorch convention); only free reshapes
# plus the (mandatory, training-mode) batch-stat finalization remain outside
# the kernels.
# --------------------------------------------------------------------------
def dense_layer_forward(x_nchw, params):
    g1, b1, w1, cb1, g2, b2, w2, cb2 = params
    N, CIN, H, W = x_nchw.shape
    C1 = w1.shape[1]          # 48
    COUT = w2.shape[-1]       # 12
    L = H * W
    M = N * L

    x_cf = x_nchw.reshape(N, CIN, L).astype(jnp.float32)      # NCHW -> (N,C,HW), free

    # BN1 training-mode batch stats, folded into per-channel scale/shift.
    mu1 = jnp.mean(x_cf, axis=(0, 2))
    var1 = jnp.var(x_cf, axis=(0, 2))
    inv1 = lax.rsqrt(var1 + EPS)
    scale1 = (g1 * inv1).reshape(CIN, 1)
    shift1 = (b1 - mu1 * g1 * inv1).reshape(CIN, 1)

    w1t16 = jnp.transpose(w1).astype(jnp.bfloat16)            # (C1, CIN) bf16
    cb1c = cb1.reshape(C1, 1)

    # ---- Pass 1: BN2 batch-stat partials (tiled, fully parallel grid) -------
    tl = _pick_tile(L)
    n_lt = L // tl
    ssum, ssq = pl.pallas_call(
        _stats_kernel,
        out_shape=(
            jax.ShapeDtypeStruct((N * n_lt, C1, 1), jnp.float32),
            jax.ShapeDtypeStruct((N * n_lt, C1, 1), jnp.float32),
        ),
        grid=(N, n_lt),
        in_specs=[
            pl.BlockSpec((None, CIN, tl), lambda n, j: (n, 0, j)),
            pl.BlockSpec((CIN, 1), lambda n, j: (0, 0)),
            pl.BlockSpec((CIN, 1), lambda n, j: (0, 0)),
            pl.BlockSpec((C1, CIN), lambda n, j: (0, 0)),
            pl.BlockSpec((C1, 1), lambda n, j: (0, 0)),
        ],
        out_specs=(
            pl.BlockSpec((None, C1, 1), lambda n, j: (n * n_lt + j, 0, 0)),
            pl.BlockSpec((None, C1, 1), lambda n, j: (n * n_lt + j, 0, 0)),
        ),
        compiler_params=pltpu.CompilerParams(
            dimension_semantics=("parallel", "parallel")),
    )(x_cf, scale1, shift1, w1t16, cb1c)

    # ---- finalize BN2 training-mode stats (f32 partials, wrapper reduce) ----
    mu2 = jnp.sum(ssum, axis=0) / M                            # (C1, 1)
    var2 = jnp.maximum(jnp.sum(ssq, axis=0) / M - mu2 * mu2, 0.0)
    inv2 = lax.rsqrt(var2 + EPS)
    scale2 = g2.reshape(C1, 1) * inv2
    shift2 = b2.reshape(C1, 1) - mu2 * scale2

    # 3x3 conv border masks (one (1, L) mask per tap, computed once)
    rows = (jnp.arange(L, dtype=jnp.int32) // W).reshape(1, L)
    cols = (jnp.arange(L, dtype=jnp.int32) % W).reshape(1, L)
    ones = jnp.ones((1, L), jnp.float32)
    row_ok = [(rows >= 1).astype(jnp.float32), ones,
              (rows <= H - 2).astype(jnp.float32)]
    col_ok = [(cols >= 1).astype(jnp.float32), ones,
              (cols <= W - 2).astype(jnp.float32)]
    mask9 = jnp.stack([row_ok[ky] * col_ok[kx]
                       for ky in range(3) for kx in range(3)], axis=0)  # (9,1,L)

    # (COUT, 9*C1) weight for the single fused-tap matmul
    w2m16 = jnp.transpose(w2.reshape(9, C1, COUT), (2, 0, 1)) \
               .reshape(COUT, 9 * C1).astype(jnp.bfloat16)
    cb2c = cb2.reshape(COUT, 1)

    # ---- Pass 2: fused forward + concat ------------------------------------
    out_cf = pl.pallas_call(
        functools.partial(_fused_kernel, H=H, W=W, CIN=CIN, C1=C1, COUT=COUT),
        out_shape=jax.ShapeDtypeStruct((N, CIN + COUT, L), jnp.float32),
        grid=(N,),
        in_specs=[
            pl.BlockSpec((None, CIN, L), lambda n: (n, 0, 0)),
            pl.BlockSpec((CIN, 1), lambda n: (0, 0)),
            pl.BlockSpec((CIN, 1), lambda n: (0, 0)),
            pl.BlockSpec((C1, CIN), lambda n: (0, 0)),
            pl.BlockSpec((C1, 1), lambda n: (0, 0)),
            pl.BlockSpec((C1, 1), lambda n: (0, 0)),
            pl.BlockSpec((C1, 1), lambda n: (0, 0)),
            pl.BlockSpec((9, 1, L), lambda n: (0, 0, 0)),
            pl.BlockSpec((COUT, 9 * C1), lambda n: (0, 0)),
            pl.BlockSpec((COUT, 1), lambda n: (0, 0)),
        ],
        out_specs=pl.BlockSpec((None, CIN + COUT, L), lambda n: (n, 0, 0)),
        compiler_params=pltpu.CompilerParams(dimension_semantics=("parallel",)),
    )(x_cf, scale1, shift1, w1t16, cb1c, scale2, shift2, mask9, w2m16, cb2c)

    return out_cf.reshape(N, CIN + COUT, H, W)                # NCHW, free reshape


# --------------------------------------------------------------------------
# Pure-JAX reference of the PyTorch forward (training-mode BN, f32 HIGHEST).
# --------------------------------------------------------------------------
def reference(x_nchw, params):
    g1, b1, w1, cb1, g2, b2, w2, cb2 = params
    x = jnp.transpose(x_nchw, (0, 2, 3, 1)).astype(jnp.float32)
    mu1 = jnp.mean(x, axis=(0, 1, 2))
    var1 = jnp.mean((x - mu1) ** 2, axis=(0, 1, 2))
    h = jax.nn.relu((x - mu1) / jnp.sqrt(var1 + EPS) * g1 + b1)
    y = jnp.einsum('nhwc,co->nhwo', h, w1,
                   precision=lax.Precision.HIGHEST) + cb1
    mu2 = jnp.mean(y, axis=(0, 1, 2))
    var2 = jnp.mean((y - mu2) ** 2, axis=(0, 1, 2))
    t = jax.nn.relu((y - mu2) / jnp.sqrt(var2 + EPS) * g2 + b2)
    conv = lax.conv_general_dilated(
        t, w2, window_strides=(1, 1), padding='SAME',
        dimension_numbers=('NHWC', 'HWIO', 'NHWC'),
        precision=lax.Precision.HIGHEST) + cb2
    out = jnp.concatenate([x, conv], axis=-1)
    return jnp.transpose(out, (0, 3, 1, 2))


if __name__ == "__main__":
    N, CIN, H, W = 2, 4, 16, 16
    C1, COUT = 48, 12

    key = jax.random.PRNGKey(0)
    ks = jax.random.split(key, 9)
    g1 = 1.0 + 0.1 * jax.random.normal(ks[0], (CIN,), jnp.float32)
    b1 = 0.1 * jax.random.normal(ks[1], (CIN,), jnp.float32)
    w1 = jax.random.normal(ks[2], (CIN, C1), jnp.float32) / jnp.sqrt(CIN)
    cb1 = 0.1 * jax.random.normal(ks[3], (C1,), jnp.float32)
    g2 = 1.0 + 0.1 * jax.random.normal(ks[4], (C1,), jnp.float32)
    b2 = 0.1 * jax.random.normal(ks[5], (C1,), jnp.float32)
    w2 = jax.random.normal(ks[6], (3, 3, C1, COUT), jnp.float32) / jnp.sqrt(9 * C1)
    cb2 = 0.1 * jax.random.normal(ks[7], (COUT,), jnp.float32)
    params = (g1, b1, w1, cb1, g2, b2, w2, cb2)

    x = jax.random.normal(ks[8], (N, CIN, H, W), jnp.float32)

    out = jax.block_until_ready(dense_layer_forward(x, params))
    ref = jax.block_until_ready(reference(x, params))

    assert out.shape == (N, CIN + COUT, H, W), out.shape
    # bf16 MXU operands (f32 accumulate) vs HIGHEST-precision f32 reference.
    assert jnp.allclose(out, ref, rtol=2e-2, atol=3e-2), float(
        jnp.max(jnp.abs(out - ref)))
    print("KERNEL_OK")
</pallas_src>

<mosaic_0001>
module attributes {stable_mosaic.version = 11 : i64} {
  func.func @_stats_kernel(%arg0: i32, %arg1: i32, %arg2: memref<1x4x256xf32, #tpu.memory_space<vmem>>, %arg3: memref<4x1xf32, #tpu.memory_space<vmem>>, %arg4: memref<4x1xf32, #tpu.memory_space<vmem>>, %arg5: memref<48x4xbf16, #tpu.memory_space<vmem>>, %arg6: memref<48x1xf32, #tpu.memory_space<vmem>>, %arg7: memref<1x48x1xf32, #tpu.memory_space<vmem>>, %arg8: memref<1x48x1xf32, #tpu.memory_space<vmem>>) attributes {dimension_semantics = [#tpu.dimension_semantics<parallel>, #tpu.dimension_semantics<parallel>], iteration_bounds = array<i64: 2, 1>, scalar_prefetch = 0 : i64, scratch_operands = 0 : i64, tpu.core_type = #tpu.core_type<tc>, window_params = [{transform_indices = @transform_0, window_bounds = array<i64: 1, 4, 256>}, {pipeline_mode = #tpu.pipeline_mode<synchronous>, transform_indices = @transform_1, window_bounds = array<i64: 4, 1>}, {pipeline_mode = #tpu.pipeline_mode<synchronous>, transform_indices = @transform_2, window_bounds = array<i64: 4, 1>}, {pipeline_mode = #tpu.pipeline_mode<synchronous>, transform_indices = @transform_3, window_bounds = array<i64: 48, 4>}, {pipeline_mode = #tpu.pipeline_mode<synchronous>, transform_indices = @transform_4, window_bounds = array<i64: 48, 1>}, {transform_indices = @transform_5, window_bounds = array<i64: 1, 48, 1>}, {transform_indices = @transform_6, window_bounds = array<i64: 1, 48, 1>}]} {
    %c0 = arith.constant 0 : index
    %c0_0 = arith.constant 0 : index
    %c0_1 = arith.constant 0 : index
    %0 = vector.load %arg2[%c0, %c0_0, %c0_1] : memref<1x4x256xf32, #tpu.memory_space<vmem>>, vector<1x4x256xf32>
    %1 = vector.shape_cast %0 : vector<1x4x256xf32> to vector<4x256xf32>
    %c0_2 = arith.constant 0 : index
    %c0_3 = arith.constant 0 : index
    %2 = vector.load %arg3[%c0_2, %c0_3] : memref<4x1xf32, #tpu.memory_space<vmem>>, vector<4x1xf32>
    %3 = vector.broadcast %2 : vector<4x1xf32> to vector<4x256xf32>
    %4 = arith.mulf %1, %3 : vector<4x256xf32>
    %c0_4 = arith.constant 0 : index
    %c0_5 = arith.constant 0 : index
    %5 = vector.load %arg4[%c0_4, %c0_5] : memref<4x1xf32, #tpu.memory_space<vmem>>, vector<4x1xf32>
    %6 = vector.broadcast %5 : vector<4x1xf32> to vector<4x256xf32>
    %7 = arith.addf %4, %6 : vector<4x256xf32>
    %cst = arith.constant 0.000000e+00 : f32
    %8 = vector.broadcast %cst : f32 to vector<4x256xf32>
    %9 = arith.maximumf %7, %8 : vector<4x256xf32>
    %c0_6 = arith.constant 0 : index
    %c0_7 = arith.constant 0 : index
    %10 = vector.load %arg5[%c0_6, %c0_7] : memref<48x4xbf16, #tpu.memory_space<vmem>>, vector<48x4xbf16>
    %11 = arith.truncf %9 : vector<4x256xf32> to vector<4x256xbf16>
    %cst_8 = arith.constant dense<0.000000e+00> : vector<48x256xf32>
    %12 = tpu.matmul %10, %11, %cst_8 {dimension_numbers = #tpu.dot_dimension_numbers<[1], [0], [0], [1], [0, 0, 1, 1], [], []>} : vector<48x4xbf16>, vector<4x256xbf16>, vector<48x256xf32> -> vector<48x256xf32>
    %c0_9 = arith.constant 0 : index
    %c0_10 = arith.constant 0 : index
    %13 = vector.load %arg6[%c0_9, %c0_10] : memref<48x1xf32, #tpu.memory_space<vmem>>, vector<48x1xf32>
    %14 = vector.broadcast %13 : vector<48x1xf32> to vector<48x256xf32>
    %15 = arith.addf %12, %14 : vector<48x256xf32>
    %cst_11 = arith.constant dense<0.000000e+00> : vector<48xf32>
    %16 = vector.multi_reduction <add>, %15, %cst_11 [1] : vector<48x256xf32> to vector<48xf32>
    %17 = vector.shape_cast %16 : vector<48xf32> to vector<48x1xf32>
    %c0_12 = arith.constant 0 : index
    %c0_13 = arith.constant 0 : index
    %c0_14 = arith.constant 0 : index
    %18 = vector.load %arg7[%c0_12, %c0_13, %c0_14] : memref<1x48x1xf32, #tpu.memory_space<vmem>>, vector<1x48x1xf32>
    %19 = vector.shape_cast %18 : vector<1x48x1xf32> to vector<48x1xf32>
    %20 = vector.shape_cast %17 : vector<48x1xf32> to vector<1x48x1xf32>
    tpu.vector_store %arg7[%c0_12, %c0_13, %c0_14], %20 {strides = array<i32>} : memref<1x48x1xf32, #tpu.memory_space<vmem>>, vector<1x48x1xf32>,
    %21 = arith.mulf %15, %15 : vector<48x256xf32>
    %cst_15 = arith.constant dense<0.000000e+00> : vector<48xf32>
    %22 = vector.multi_reduction <add>, %21, %cst_15 [1] : vector<48x256xf32> to vector<48xf32>
    %23 = vector.shape_cast %22 : vector<48xf32> to vector<48x1xf32>
    %c0_16 = arith.constant 0 : index
    %c0_17 = arith.constant 0 : index
    %c0_18 = arith.constant 0 : index
    %24 = vector.load %arg8[%c0_16, %c0_17, %c0_18] : memref<1x48x1xf32, #tpu.memory_space<vmem>>, vector<1x48x1xf32>
    %25 = vector.shape_cast %24 : vector<1x48x1xf32> to vector<48x1xf32>
    %26 = vector.shape_cast %23 : vector<48x1xf32> to vector<1x48x1xf32>
    tpu.vector_store %arg8[%c0_16, %c0_17, %c0_18], %26 {strides = array<i32>} : memref<1x48x1xf32, #tpu.memory_space<vmem>>, vector<1x48x1xf32>,
    return
  }
  func.func @transform_0(%arg0: i32, %arg1: i32) -> (i32, i32, i32) {
    %c0_i32 = arith.constant 0 : i32
    %c0_i32_0 = arith.constant 0 : i32
    return %arg0, %c0_i32, %arg1 : i32, i32, i32
  }
  func.func @transform_1(%arg0: i32, %arg1: i32) -> (i32, i32) {
    %c0_i32 = arith.constant 0 : i32
    %c0_i32_0 = arith.constant 0 : i32
    %c0_i32_1 = arith.constant 0 : i32
    return %c0_i32, %c0_i32_0 : i32, i32
  }
  func.func @transform_2(%arg0: i32, %arg1: i32) -> (i32, i32) {
    %c0_i32 = arith.constant 0 : i32
    %c0_i32_0 = arith.constant 0 : i32
    %c0_i32_1 = arith.constant 0 : i32
    return %c0_i32, %c0_i32_0 : i32, i32
  }
  func.func @transform_3(%arg0: i32, %arg1: i32) -> (i32, i32) {
    %c0_i32 = arith.constant 0 : i32
    %c0_i32_0 = arith.constant 0 : i32
    %c0_i32_1 = arith.constant 0 : i32
    return %c0_i32, %c0_i32_0 : i32, i32
  }
  func.func @transform_4(%arg0: i32, %arg1: i32) -> (i32, i32) {
    %c0_i32 = arith.constant 0 : i32
    %c0_i32_0 = arith.constant 0 : i32
    %c0_i32_1 = arith.constant 0 : i32
    return %c0_i32, %c0_i32_0 : i32, i32
  }
  func.func @transform_5(%arg0: i32, %arg1: i32) -> (i32, i32, i32) {
    %c1_i32 = arith.constant 1 : i32
    %0 = arith.muli %arg0, %c1_i32 : i32
    %1 = arith.addi %0, %arg1 : i32
    %c0_i32 = arith.constant 0 : i32
    %c0_i32_0 = arith.constant 0 : i32
    %c0_i32_1 = arith.constant 0 : i32
    return %1, %c0_i32, %c0_i32_0 : i32, i32, i32
  }
  func.func @transform_6(%arg0: i32, %arg1: i32) -> (i32, i32, i32) {
    %c1_i32 = arith.constant 1 : i32
    %0 = arith.muli %arg0, %c1_i32 : i32
    %1 = arith.addi %0, %arg1 : i32
    %c0_i32 = arith.constant 0 : i32
    %c0_i32_0 = arith.constant 0 : i32
    %c0_i32_1 = arith.constant 0 : i32
    return %1, %c0_i32, %c0_i32_0 : i32, i32, i32
  }
}

</mosaic_0001>

<bundles_post_ra>
// kernel: tpu_custom_call.1
= control target key start
LH: loop header
LB: loop body
LE: loop exit
PB: predicated region body
PF: predicated region fallthrough
CT: control target
= control target key end

     0   :  { %s754_s21 = smov 0   ;;  %s756_s22 = smov 0   ;;  %s839_s0 = inlined_call_operand.vmem [shape: f32[2,4,256], index: 0, kind: input, shape index: {}]   ;;  %s840_s1 = inlined_call_operand.vmem [shape: f32[4,1], index: 1, kind: input, shape index: {}]   ;;  %s841_s2 = inlined_call_operand.vmem [shape: f32[4,1], index: 2, kind: input, shape index: {}]   ;;  %s842_s3 = inlined_call_operand.vmem [shape: bf16[48,4], index: 3, kind: input, shape index: {}]   ;;  %s843_s4 = inlined_call_operand.vmem [shape: f32[48,1], index: 4, kind: input, shape index: {}]   ;;  %s844_s5 = inlined_call_operand.vmem [shape: f32[2,48,1], index: 5, kind: output, shape index: {0}]   ;;  %s845_s6 = inlined_call_operand.vmem [shape: f32[2,48,1], index: 6, kind: output, shape index: {1}]  }
   0x1   :  { %s758_s23 = smov 0  }
   0x2 LB: > { %s29_s24 = sadd.s32 1, %s711_s22  ;;  %p632_p0 = scmp.ge.s32.totalorder %s715_s23, 1  ;;  %s715_s23 = sphi %s758_s23, %s17_s23   ;;  %s711_s22 = sphi %s756_s22, %s847_s22   ;;  %s707_s21 = sphi %s754_s21, %s846_s21  }
   0x3   : > { %p31_p1 = scmp.ge.s32.totalorder %s29_s24, 2  ;;  %p238_p2 = scmp.lt.s32.totalorder %s715_s23, 3 }
   0x5   : > { %s849_s24 = smov (%p31_p1, %s29_s24), 0  ;;  %p239_p3 = pnand %p632_p0, %p238_p2 }
   0x6   : > { %p280_p4 = scmp.lt.s32.totalorder (!%p239_p3), %s707_s21, 1 }
   0x7   : > { %242 = sbr.rel (%p239_p3) target bundleno = 443 (0x1bb), region = 40 }
   0xc   : > { %v305_v0 = vld [vmem:[%s840_s1] sm:$0xf]  ;;  %v717_v1 = vmov 0   ;;  %s851_s21 = smov (!%p280_p4, %s707_s21), 1  ;;  %v718_v5 = vmov 839922192  }
   0xd   : > { %690 = vset.pattern.permute.xlu0 %v717_v1  ;;  %691 = vset.pattern.permute.xlu1 %v717_v1  ;;  %v316_v2 = vld [vmem:[%s841_s2] sm:$0xf]  ;;  %v311_v6 = vunpack.c.l.s4 %v718_v5  ;;  %s657_s9 = sshll.u32 %s851_s21, 3  ;;  %v343_v9 = vld [vmem:[%s843_s4 + $0x8] sm:$0xff]  ;;  %v344_v18 = vld [vmem:[%s843_s4 + $0x10] sm:$0xff]  ;;  %vm403_vm0 = vcmask 1041408  }
   0xe   : > { %308 = vperm.xlu0 %690, %v305_v0   ;;  %692 = vset.pattern.permute.xlu2 %v717_v1  ;;  %v346_v3 = vld [vmem:[%s843_s4 + $0x20] sm:$0xff]  ;;  %s287_s14 = scalar_lea.vmem %s839_s0, %s657_s9  ;;  %v347_v15 = vld [vmem:[%s843_s4 + $0x28] sm:$0xff]  ;;  %v345_v19 = vld [vmem:[%s843_s4 + $0x18] sm:$0xff]  ;;  %vm393_vm1 = vcmask 31744   ;;  %s663_s7 = smul.u32 48, %s851_s21  ;;  %vm476_vm2 = vcmask 7168  }
   0xf   : > { %v342_v4 = vld [vmem:[%s843_s4] sm:$0xff]  ;;  %v312_v8 = vunpack.c.0.s8 %v311_v6  ;;  %360 = vperm.xlu2 %692, %v344_v18   ;;  %v659_v27 = vld [vmem:[%s842_s3 + $0x8] sm:$0xff]  ;;  %v660_v28 = vld [vmem:[%s842_s3 + $0x10] sm:$0xff] }
  0x10   : > { %350 = vperm.xlu1 %691, %v342_v4   ;;  %v304_v11 = vld [vmem:[%s287_s14] sm:$0xff]  ;;  %s294_s10 = scalar_lea.vmem %s844_s5, %s663_s7  ;;  %s301_s13 = scalar_lea.vmem %s845_s6, %s663_s7 }
  0x11   : > { %v658_v26 = vld [vmem:[%s842_s3] sm:$0xff] }
  0x16   : > { %319 = vperm.xlu0 %690, %v316_v2  }
  0x17   : > { %365 = vperm.xlu2 %692, %v345_v19  }
  0x18   : > { %355 = vperm.xlu1 %691, %v343_v9  }
  0x1e   : > { %370 = vperm.xlu0 %690, %v346_v3  }
  0x20   : > { %375 = vperm.xlu1 %691, %v347_v15  }
  0x69   : > { %v361_v34 = vpop.permute.xlu2 %360 }
  0x71   : > { %v366_v51 = vpop.permute.xlu2 %365 }
  0x80   : > { %v309_v7 = vpop.permute.xlu0 %308 }
  0x81   : > { %v313_v10 = vperm.slane %v309_v7, %v312_v8 }
  0x82   : > { %v351_v29 = vpop.permute.xlu1 %350 }
  0x83   : > { %v315_v13 = vmul.f32 %v313_v10, %v304_v11 }
  0x88   : > { %v320_v12 = vpop.permute.xlu0 %319 }
  0x89   : > { %v324_v14 = vperm.slane %v320_v12, %v312_v8 }
  0x8a   : > { %v356_v41 = vpop.permute.xlu1 %355 }
  0x8b   : > { %v326_v16 = vadd.f32 %v324_v14, %v315_v13 }
  0x8d   : > { %v327_v17 = vmax.f32 %v326_v16, 0.0 }
  0x8f   : > { %335 = vst [vmem:[#allocation1] ss:$2 sm:$0xff] %v327_v17 }
  0x90   : > { %v371_v3 = vpop.permute.xlu0 %370 }
  0x92   : > { %v376_v6 = vpop.permute.xlu1 %375 }
  0x96   : > { %v336_v20 = vld.sshfl [vmem:[#allocation1] sm:$0xff pattern:$0x75316420]  ;;  %v337_v21 = vld.sshfl [vmem:[#allocation1 + $0x8] sm:$0xff pattern:$0x75316420] }
  0x97   : > { %v340_v22 = vpack.c.bf16 %v336_v20, %v336_v20  ;;  %v341_v23 = vpack.c.bf16 %v337_v21, %v337_v21 }
  0x99   : > { %v405_v24 = vsel %vm403_vm0, %v340_v22, 0  ;;  %v408_v25 = vsel %vm403_vm0, %v341_v23, 0 }
  0x9a   : > { %417 = vmatpush.bf16.msra.mxu0 %v405_v24  ;;  %661 = vmatpush.bf16.msra.mxu2 %v405_v24 }
  0x9b   : > { %441 = vmatpush.bf16.msra.mxu1 %v408_v25  ;;  %662 = vmatpush.bf16.msra.mxu3 %v408_v25 }
  0x9d   : > { %649 = vmatmul.msk.bf16.vlgmr.msra.gmra.mxu0 %vm393_vm1, %v658_v26  ;;  %650 = vmatmul.msk.bf16.vlgmr.msra.gmra.mxu2 %vm393_vm1, %v659_v27 }
  0x9e   : > { %652 = vmatmul.msk.bf16.vlgmr.msra.gmra.mxu1 %vm393_vm1, %v658_v26  ;;  %653 = vmatmul.msk.bf16.vlgmr.msra.gmra.mxu3 %vm393_vm1, %v659_v27 }
  0xad   : > { %651 = vmatmul.msk.bf16.gmra.mxu2 %vm393_vm1, %v660_v28 }
  0xae   : > { %654 = vmatmul.msk.bf16.gmra.mxu3 %vm393_vm1, %v660_v28 }
 0x11a   : > { %v419_v30 = vpop.f32.mrf.mxu0 }
 0x11b   : > { %v420_v31 = vadd.f32 %v419_v30, %v351_v29  ;;  %v443_v32 = vpop.f32.mrf.mxu1 }
 0x11c   : > { %v444_v33 = vadd.f32 %v443_v32, %v351_v29 }
 0x11d   : > { %v483_v35 = vmul.f32 %v420_v31, %v420_v31 }
 0x11e   : > { %v484_v36 = vmul.f32 %v444_v33, %v444_v33  ;;  %v458_v37 = vadd.f32 %v444_v33, %v420_v31 }
 0x120   : > { %v424_v38 = vpop.f32.mrf.mxu2  ;;  %v495_v39 = vadd.f32 %v484_v36, %v483_v35  ;;  %459 = vadd.xlane.f32.xlu2 %v458_v37 }
 0x121   : > { %v448_v40 = vpop.f32.mrf.mxu3  ;;  %v425_v45 = vadd.f32 %v424_v38, %v361_v34 }
 0x122   : > { %496 = vadd.xlane.f32.xlu1 %v495_v39  ;;  %v421_v42 = vpop.f32.mrf.mxu0  ;;  %v449_v46 = vadd.f32 %v448_v40, %v361_v34 }
 0x123   : > { %v422_v43 = vadd.f32 %v421_v42, %v356_v41  ;;  %v445_v44 = vpop.f32.mrf.mxu1  ;;  %v487_v57 = vmul.f32 %v425_v45, %v425_v45 }
 0x124   : > { %v446_v47 = vadd.f32 %v445_v44, %v356_v41  ;;  %v464_v53 = vadd.f32 %v449_v46, %v425_v45  ;;  %v488_v58 = vmul.f32 %v449_v46, %v449_v46 }
 0x125   : > { %v485_v48 = vmul.f32 %v422_v43, %v422_v43 }
 0x126   : > { %v486_v49 = vmul.f32 %v446_v47, %v446_v47  ;;  %v461_v50 = vadd.f32 %v446_v47, %v422_v43  ;;  %v501_v62 = vadd.f32 %v488_v58, %v487_v57 }
 0x128   : > { %462 = vadd.xlane.f32.xlu0 %v461_v50  ;;  %v426_v52 = vpop.f32.mrf.mxu2  ;;  %v498_v54 = vadd.f32 %v486_v49, %v485_v48 }
 0x129   : > { %v427_v55 = vadd.f32 %v426_v52, %v366_v51  ;;  %v450_v56 = vpop.f32.mrf.mxu3 }
 0x12a   : > { %v451_v59 = vadd.f32 %v450_v56, %v366_v51  ;;  %465 = vadd.xlane.f32.xlu1 %v464_v53  ;;  %499 = vadd.xlane.f32.xlu2 %v498_v54 }
 0x12b   : > { %v489_v60 = vmul.f32 %v427_v55, %v427_v55 }
 0x12c   : > { %v490_v61 = vmul.f32 %v451_v59, %v451_v59  ;;  %v467_v1 = vadd.f32 %v451_v59, %v427_v55 }
 0x12e   : > { %v504_v0 = vadd.f32 %v490_v61, %v489_v60 }
 0x130   : > { %502 = vadd.xlane.f32.xlu0 %v501_v62  ;;  %v429_v63 = vpop.f32.mrf.mxu2 }
 0x131   : > { %v453_v2 = vpop.f32.mrf.mxu3  ;;  %v430_v4 = vadd.f32 %v429_v63, %v371_v3 }
 0x132   : > { %505 = vadd.xlane.f32.xlu1 %v504_v0  ;;  %468 = vadd.xlane.f32.xlu2 %v467_v1  ;;  %v454_v5 = vadd.f32 %v453_v2, %v371_v3 }
 0x133   : > { %v491_v12 = vmul.f32 %v430_v4, %v430_v4 }
 0x134   : > { %v470_v8 = vadd.f32 %v454_v5, %v430_v4  ;;  %v492_v13 = vmul.f32 %v454_v5, %v454_v5 }
 0x136   : > { %v507_v17 = vadd.f32 %v492_v13, %v491_v12 }
 0x138   : > { %v431_v7 = vpop.f32.mrf.mxu2 }
 0x139   : > { %v432_v9 = vadd.f32 %v431_v7, %v376_v6  ;;  %v455_v10 = vpop.f32.mrf.mxu3 }
 0x13a   : > { %v456_v11 = vadd.f32 %v455_v10, %v376_v6  ;;  %471 = vadd.xlane.f32.xlu2 %v470_v8 }
 0x13b   : > { %v493_v15 = vmul.f32 %v432_v9, %v432_v9 }
 0x13c   : > { %v473_v14 = vadd.f32 %v456_v11, %v432_v9  ;;  %v494_v16 = vmul.f32 %v456_v11, %v456_v11 }
 0x13e   : > { %474 = vadd.xlane.f32.xlu0 %v473_v14  ;;  %v510_v18 = vadd.f32 %v494_v16, %v493_v15 }
 0x142   : > { %508 = vadd.xlane.f32.xlu2 %v507_v17 }
 0x146   : > { %511 = vadd.xlane.f32.xlu0 %v510_v18 }
 0x193   : > { %v460_v19 = vpop.xlane.xlu2 %459 }
 0x194   : > { %477 = vst.msk [vmem:[%s294_s10] sm:$0xff] %vm476_vm2, %v460_v19 }
 0x195   : > { %v497_v20 = vpop.xlane.xlu1 %496 }
 0x196   : > { %513 = vst.msk [vmem:[%s301_s13] sm:$0xff] %vm476_vm2, %v497_v20 }
 0x19b   : > { %v463_v21 = vpop.xlane.xlu0 %462 }
 0x19c   : > { %478 = vst.msk [vmem:[%s294_s10 + $0x8] sm:$0xff] %vm476_vm2, %v463_v21 }
 0x19d   : > { %v466_v22 = vpop.xlane.xlu1 %465  ;;  %v500_v23 = vpop.xlane.xlu2 %499 }
 0x19e   : > { %479 = vst.msk [vmem:[%s294_s10 + $0x10] sm:$0xff] %vm476_vm2, %v466_v22 }
 0x19f   : > { %514 = vst.msk [vmem:[%s301_s13 + $0x8] sm:$0xff] %vm476_vm2, %v500_v23 }
 0x1a3   : > { %v503_v24 = vpop.xlane.xlu0 %502 }
 0x1a4   : > { %515 = vst.msk [vmem:[%s301_s13 + $0x10] sm:$0xff] %vm476_vm2, %v503_v24 }
 0x1a5   : > { %v506_v25 = vpop.xlane.xlu1 %505  ;;  %v469_v26 = vpop.xlane.xlu2 %468 }
 0x1a6   : > { %516 = vst.msk [vmem:[%s301_s13 + $0x18] sm:$0xff] %vm476_vm2, %v506_v25 }
 0x1a7   : > { %480 = vst.msk [vmem:[%s294_s10 + $0x18] sm:$0xff] %vm476_vm2, %v469_v26 }
 0x1ad   : > { %v472_v27 = vpop.xlane.xlu2 %471 }
 0x1ae   : > { %481 = vst.msk [vmem:[%s294_s10 + $0x20] sm:$0xff] %vm476_vm2, %v472_v27 }
 0x1b1   : > { %v475_v28 = vpop.xlane.xlu0 %474 }
 0x1b2   : > { %482 = vst.msk [vmem:[%s294_s10 + $0x28] sm:$0xff] %vm476_vm2, %v475_v28 }
 0x1b5   : > { %v509_v29 = vpop.xlane.xlu2 %508 }
 0x1b6   : > { %517 = vst.msk [vmem:[%s301_s13 + $0x20] sm:$0xff] %vm476_vm2, %v509_v29 }
 0x1b9   : > { %v512_v30 = vpop.xlane.xlu0 %511 }
 0x1ba   : > { %518 = vst.msk [vmem:[%s301_s13 + $0x28] sm:$0xff] %vm476_vm2, %v512_v30 }
 0x1bb PF: > { %s17_s23 = sadd.s32 1, %s715_s23   ;;  %s846_s21 = smov %s711_s22 }
 0x1bc   : > { %p14_p5 = scmp.ge.s32.totalorder %s17_s23, 4   ;;  %s847_s22 = smov %s849_s24 }
 0x1be   :  { %16 = sbr.rel (!%p14_p5) target bundleno = 2 (0x2), region = 82 }

</bundles_post_ra>
